<compile_context>
chip_gen: v7x
topology: tpu7x:2x2x1
jax: 0.10.0
libtpu: 0.0.40
codegen_flags: <defaults>
</compile_context>

<pallas_src>
import functools

import numpy as np
import jax
import jax.numpy as jnp
from jax.experimental import pallas as pl
from jax.experimental.pallas import tpu as pltpu


# ---------------------------------------------------------------------------
# melscale_fbanks (htk scale, no norm) — identical math to
# torchaudio.functional.melscale_fbanks(n_stft, f_min, f_max, n_mels, sr).
# ---------------------------------------------------------------------------
def melscale_fbanks_htk(n_freqs, f_min, f_max, n_mels, sample_rate):
    all_freqs = np.linspace(0.0, sample_rate // 2, n_freqs)

    def hz_to_mel(f):
        return 2595.0 * np.log10(1.0 + f / 700.0)

    def mel_to_hz(m):
        return 700.0 * (10.0 ** (m / 2595.0) - 1.0)

    m_min, m_max = hz_to_mel(f_min), hz_to_mel(f_max)
    m_pts = np.linspace(m_min, m_max, n_mels + 2)
    f_pts = mel_to_hz(m_pts)
    f_diff = f_pts[1:] - f_pts[:-1]                      # (n_mels + 1,)
    slopes = f_pts[None, :] - all_freqs[:, None]         # (n_freqs, n_mels + 2)
    down = -slopes[:, :-2] / f_diff[:-1]
    up = slopes[:, 2:] / f_diff[1:]
    fb = np.maximum(0.0, np.minimum(down, up))
    return fb.astype(np.float32)                         # (n_freqs, n_mels)


# ---------------------------------------------------------------------------
# Pallas kernel: one (TILE_M, K) x (K, N) MXU matmul per grid step.
# ---------------------------------------------------------------------------
def _melscale_kernel(spec_ref, fb_ref, out_ref):
    out_ref[...] = jnp.dot(
        spec_ref[...], fb_ref[...], preferred_element_type=jnp.float32
    ).astype(out_ref.dtype)


def _round_up(x, m):
    return (x + m - 1) // m * m


def _run_kernel(lhs_p, fb_p, tile_m):
    m_pad, k_pad = lhs_p.shape
    n_pad = fb_p.shape[1]
    return pl.pallas_call(
        _melscale_kernel,
        out_shape=jax.ShapeDtypeStruct((m_pad, n_pad), jnp.float32),
        grid_spec=pltpu.PrefetchScalarGridSpec(
            num_scalar_prefetch=0,
            grid=(m_pad // tile_m,),
            in_specs=[
                pl.BlockSpec((tile_m, k_pad), lambda i: (i, 0)),
                pl.BlockSpec((k_pad, n_pad), lambda i: (0, 0)),
            ],
            out_specs=pl.BlockSpec((tile_m, n_pad), lambda i: (i, 0)),
        ),
        compiler_params=pltpu.CompilerParams(
            dimension_semantics=("parallel",),
        ),
    )(lhs_p, fb_p)


# ---------------------------------------------------------------------------
# Wrapper reproducing the module's forward(): shape plumbing / lane padding in
# plain JAX, the matmul on the MXU inside the Pallas kernel.
# ---------------------------------------------------------------------------
@functools.partial(jax.jit, static_argnames=("tile_m",))
def librosa_mel_scale(specgram, fb, *, tile_m=256):
    orig_dtype = specgram.dtype
    shape = specgram.shape
    freq, time = shape[-2], shape[-1]
    n_mels = fb.shape[1]

    lead = shape[:-2]
    batch = int(np.prod(lead)) if lead else 1
    spec3 = specgram.reshape(batch, freq, time)

    # transpose(-1, -2): (B, time, freq), then flatten rows -> (M, freq)
    lhs = jnp.transpose(spec3, (0, 2, 1)).reshape(batch * time, freq)
    m_rows = batch * time

    # Pad K (freq) and N (n_mels) to lane width, M to the row-tile size.
    k_pad = _round_up(freq, 128)
    n_pad = _round_up(n_mels, 128)
    tm = min(tile_m, _round_up(m_rows, 8))
    m_pad = _round_up(m_rows, tm)

    lhs_p = jnp.zeros((m_pad, k_pad), jnp.float32)
    lhs_p = lhs_p.at[:m_rows, :freq].set(lhs.astype(jnp.float32))
    fb_p = jnp.zeros((k_pad, n_pad), jnp.float32)
    fb_p = fb_p.at[:freq, :n_mels].set(fb.astype(jnp.float32))

    mel2d = _run_kernel(lhs_p, fb_p, tm)[:m_rows, :n_mels]

    mel = mel2d.reshape(batch, time, n_mels)
    mel = jnp.transpose(mel, (0, 2, 1))                  # (B, n_mels, time)
    return mel.reshape(lead + (n_mels, time)).astype(orig_dtype)


# ---------------------------------------------------------------------------
# Pure-JAX reference (same math as the PyTorch forward).
# ---------------------------------------------------------------------------
def _reference(specgram, fb):
    return jnp.einsum("...ft,fm->...mt", specgram, fb)


if __name__ == "__main__":
    # Small shapes consistent with the module defaults.
    batch, n_stft, n_mels, time = 2, 201, 128, 16
    sample_rate = 16000

    fb = jnp.asarray(
        melscale_fbanks_htk(n_stft, 0.0, float(sample_rate // 2),
                            n_mels, sample_rate)
    )

    key = jax.random.PRNGKey(0)
    specgram = jax.random.uniform(key, (batch, n_stft, time), jnp.float32)

    mel = librosa_mel_scale(specgram, fb)
    mel = jax.block_until_ready(mel)

    assert mel.shape == (batch, n_mels, time)
    assert bool(jnp.all(jnp.isfinite(mel)))

    ref = _reference(specgram, fb)
    np.testing.assert_allclose(np.asarray(mel), np.asarray(ref),
                               rtol=1e-5, atol=1e-5)

    print("KERNEL_OK")
</pallas_src>

<mosaic_0001>
module attributes {stable_mosaic.version = 11 : i64} {
  func.func @_melscale_kernel(%arg0: i32, %arg1: memref<32x256xf32, #tpu.memory_space<vmem>>, %arg2: memref<256x128xf32, #tpu.memory_space<vmem>>, %arg3: memref<32x128xf32, #tpu.memory_space<vmem>>) attributes {dimension_semantics = [#tpu.dimension_semantics<parallel>], iteration_bounds = array<i64: 1>, scalar_prefetch = 0 : i64, scratch_operands = 0 : i64, tpu.core_type = #tpu.core_type<tc>, window_params = [{transform_indices = @transform_0, window_bounds = array<i64: 32, 256>}, {pipeline_mode = #tpu.pipeline_mode<synchronous>, transform_indices = @transform_1, window_bounds = array<i64: 256, 128>}, {transform_indices = @transform_2, window_bounds = array<i64: 32, 128>}]} {
    %c0 = arith.constant 0 : index
    %c0_0 = arith.constant 0 : index
    %0 = vector.load %arg1[%c0, %c0_0] : memref<32x256xf32, #tpu.memory_space<vmem>>, vector<32x256xf32>
    %c0_1 = arith.constant 0 : index
    %c0_2 = arith.constant 0 : index
    %1 = vector.load %arg2[%c0_1, %c0_2] : memref<256x128xf32, #tpu.memory_space<vmem>>, vector<256x128xf32>
    %cst = arith.constant dense<0.000000e+00> : vector<32x128xf32>
    %2 = tpu.matmul %0, %1, %cst {dimension_numbers = #tpu.dot_dimension_numbers<[1], [0], [0], [1], [0, 0, 1, 1], [], []>} : vector<32x256xf32>, vector<256x128xf32>, vector<32x128xf32> -> vector<32x128xf32>
    %c0_3 = arith.constant 0 : index
    %c0_4 = arith.constant 0 : index
    %3 = vector.load %arg3[%c0_3, %c0_4] : memref<32x128xf32, #tpu.memory_space<vmem>>, vector<32x128xf32>
    tpu.vector_store %arg3[%c0_3, %c0_4], %2 {strides = array<i32>} : memref<32x128xf32, #tpu.memory_space<vmem>>, vector<32x128xf32>,
    return
  }
  func.func @transform_0(%arg0: i32) -> (i32, i32) {
    %c0_i32 = arith.constant 0 : i32
    %c0_i32_0 = arith.constant 0 : i32
    return %arg0, %c0_i32 : i32, i32
  }
  func.func @transform_1(%arg0: i32) -> (i32, i32) {
    %c0_i32 = arith.constant 0 : i32
    %c0_i32_0 = arith.constant 0 : i32
    %c0_i32_1 = arith.constant 0 : i32
    return %c0_i32, %c0_i32_0 : i32, i32
  }
  func.func @transform_2(%arg0: i32) -> (i32, i32) {
    %c0_i32 = arith.constant 0 : i32
    %c0_i32_0 = arith.constant 0 : i32
    return %arg0, %c0_i32 : i32, i32
  }
}

</mosaic_0001>

<bundles_post_ra>
// kernel: librosa_mel_scale.1
= control target key start
LH: loop header
LB: loop body
LE: loop exit
PB: predicated region body
PF: predicated region fallthrough
CT: control target
= control target key end

     0   :  { %s426_s0 = inlined_call_operand.vmem [shape: f32[32,256], index: 0, kind: input, shape index: {}]   ;;  %s427_s1 = inlined_call_operand.vmem [shape: f32[256,128], index: 1, kind: input, shape index: {}]   ;;  %s428_s2 = inlined_call_operand.hbm [shape: f32[32,128], index: 2, kind: output, shape index: {}]  }
   0x1   :  { %v36_v0 = vld [vmem:[%s427_s1 + $0x80] sm:$0xff]  ;;  %v37_v1 = vld [vmem:[%s427_s1 + $0x88] sm:$0xff]  ;;  %v38_v5 = vld [vmem:[%s427_s1 + $0x90] sm:$0xff] }
   0x2   :  { %v20_v2 = vld [vmem:[%s427_s1] sm:$0xff]  ;;  %v201_v3 = vpack.c.bf16 %v37_v1, %v36_v0  ;;  %v21_v4 = vld [vmem:[%s427_s1 + $0x8] sm:$0xff]  ;;  %v39_v6 = vld [vmem:[%s427_s1 + $0x98] sm:$0xff] }
   0x3   :  { %v203_v7 = vpack.c.bf16 %v21_v4, %v20_v2  ;;  %v205_v8 = vpack.c.bf16 %v39_v6, %v38_v5  ;;  %v22_v9 = vld [vmem:[%s427_s1 + $0x10] sm:$0xff]  ;;  %v23_v10 = vld [vmem:[%s427_s1 + $0x18] sm:$0xff]  ;;  %v40_v11 = vld [vmem:[%s427_s1 + $0xa0] sm:$0xff] }
   0x4   :  { %202 = vmatprep.subr.bf16.mxu0 %v201_v3  ;;  %233 = vmatprep.subr.bf16.mxu1 %v201_v3  ;;  %v41_v12 = vld [vmem:[%s427_s1 + $0xa8] sm:$0xff]  ;;  %v207_v13 = vpack.c.bf16 %v23_v10, %v22_v9  ;;  %v24_v15 = vld [vmem:[%s427_s1 + $0x20] sm:$0xff]  ;;  %v42_v17 = vld [vmem:[%s427_s1 + $0xb0] sm:$0xff] }
   0x5   :  { %204 = vmatpush3.bf16.msra.mxu0 %v203_v7  ;;  %241 = vmatpush3.bf16.msra.mxu1 %v203_v7  ;;  %v209_v14 = vpack.c.bf16 %v41_v12, %v40_v11  ;;  %v25_v16 = vld [vmem:[%s427_s1 + $0x28] sm:$0xff]  ;;  %v43_v18 = vld [vmem:[%s427_s1 + $0xb8] sm:$0xff]  ;;  %v26_v21 = vld [vmem:[%s427_s1 + $0x30] sm:$0xff] }
   0x6   :  { %206 = vmatprep.subr.bf16.mxu0 %v205_v8  ;;  %234 = vmatprep.subr.bf16.mxu1 %v205_v8  ;;  %v211_v19 = vpack.c.bf16 %v25_v16, %v24_v15  ;;  %v213_v20 = vpack.c.bf16 %v43_v18, %v42_v17  ;;  %v27_v22 = vld [vmem:[%s427_s1 + $0x38] sm:$0xff]  ;;  %v44_v23 = vld [vmem:[%s427_s1 + $0xc0] sm:$0xff]  ;;  %v45_v24 = vld [vmem:[%s427_s1 + $0xc8] sm:$0xff] }
   0x7   :  { %v13_v25 = vld [vmem:[%s426_s0 + $0x8] sm:$0xff]  ;;  %v215_v27 = vpack.c.bf16 %v27_v22, %v26_v21  ;;  %v217_v28 = vpack.c.bf16 %v45_v24, %v44_v23  ;;  %v28_v29 = vld [vmem:[%s427_s1 + $0x40] sm:$0xff] }
   0x8   :  { %116 = vmatprep.mubr.f32.mxu0 %v13_v25  ;;  %v17_v26 = vld [vmem:[%s426_s0 + $0x28] sm:$0xff] }
   0x9   :  { %208 = vmatpush3.bf16.msra.mxu0 %v207_v13  ;;  %242 = vmatpush3.bf16.msra.mxu1 %v207_v13  ;;  %v29_v30 = vld [vmem:[%s427_s1 + $0x48] sm:$0xff] }
   0xa   :  { %210 = vmatprep.subr.bf16.mxu0 %v209_v14  ;;  %235 = vmatprep.subr.bf16.mxu1 %v209_v14 }
   0xd   :  { %212 = vmatpush3.bf16.msra.mxu0 %v211_v19  ;;  %243 = vmatpush3.bf16.msra.mxu1 %v211_v19 }
   0xe   :  { %214 = vmatprep.subr.bf16.mxu0 %v213_v20  ;;  %236 = vmatprep.subr.bf16.mxu1 %v213_v20 }
   0xf   :  { %7 = vsyncpa [#allocation3], 0  ;;  %v46_v31 = vld [vmem:[%s427_s1 + $0xd0] sm:$0xff]  ;;  %v47_v32 = vld [vmem:[%s427_s1 + $0xd8] sm:$0xff]  ;;  %126 = vmatprep.mubr.f32.mxu1 %v17_v26  ;;  %v219_v33 = vpack.c.bf16 %v29_v30, %v28_v29  ;;  %s276_s4 = smov [#allocation2]  }
  0x10   :  { %v221_v34 = vpack.c.bf16 %v47_v32, %v46_v31  ;;  %v30_v35 = vld [vmem:[%s427_s1 + $0x50] sm:$0xff]  ;;  %v31_v36 = vld [vmem:[%s427_s1 + $0x58] sm:$0xff]  ;;  %v48_v37 = vld [vmem:[%s427_s1 + $0xe0] sm:$0xff]  ;;  %s146_s5 = sshll.u32 %s276_s4, 4  ;;  %s147_s5 = int_to_ptr.vmem [resolvable:$true] %s146_s5 }
  0x11   :  { %216 = vmatpush3.bf16.msra.mxu0 %v215_v27  ;;  %244 = vmatpush3.bf16.msra.mxu1 %v215_v27  ;;  %v49_v38 = vld [vmem:[%s427_s1 + $0xe8] sm:$0xff]  ;;  %v223_v39 = vpack.c.bf16 %v31_v36, %v30_v35  ;;  %v32_v41 = vld [vmem:[%s427_s1 + $0x60] sm:$0xff]  ;;  %v50_v43 = vld [vmem:[%s427_s1 + $0xf0] sm:$0xff]  ;;  %p257_p1 = scmp.lt.s32.totalorder %s147_s5, %s147_s5 }
  0x12   :  { %218 = vmatprep.subr.bf16.mxu0 %v217_v28  ;;  %237 = vmatprep.subr.bf16.mxu1 %v217_v28  ;;  %v225_v40 = vpack.c.bf16 %v49_v38, %v48_v37  ;;  %v33_v42 = vld [vmem:[%s427_s1 + $0x68] sm:$0xff]  ;;  %v51_v44 = vld [vmem:[%s427_s1 + $0xf8] sm:$0xff]  ;;  %v34_v47 = vld [vmem:[%s427_s1 + $0x70] sm:$0xff] }
  0x13   :  { %v227_v45 = vpack.c.bf16 %v33_v42, %v32_v41  ;;  %v229_v46 = vpack.c.bf16 %v51_v44, %v50_v43  ;;  %v35_v48 = vld [vmem:[%s427_s1 + $0x78] sm:$0xff]  ;;  %v12_v50 = vld [vmem:[%s426_s0] sm:$0xff]  ;;  %v14_v54 = vld [vmem:[%s426_s0 + $0x10] sm:$0xff] }
  0x14   :  { %v231_v49 = vpack.c.bf16 %v35_v48, %v34_v47  ;;  %v16_v51 = vld [vmem:[%s426_s0 + $0x20] sm:$0xff]  ;;  %v15_v52 = vld [vmem:[%s426_s0 + $0x18] sm:$0xff]  ;;  %v18_v55 = vld [vmem:[%s426_s0 + $0x30] sm:$0xff] }
  0x15   :  { %220 = vmatpush3.bf16.msra.mxu0 %v219_v33  ;;  %245 = vmatpush3.bf16.msra.mxu1 %v219_v33  ;;  %v19_v53 = vld [vmem:[%s426_s0 + $0x38] sm:$0xff]  ;;  %s252_s0 = scalar_lea.vmem %s147_s5, 512 }
  0x16   :  { %222 = vmatprep.subr.bf16.mxu0 %v221_v34  ;;  %238 = vmatprep.subr.bf16.mxu1 %v221_v34  ;;  %p253_p0 = scmp.ne.s32.totalorder %s147_s5, %s252_s0  ;;  %p258_p2 = scmp.lt.s32.totalorder %s252_s0, %s252_s0 }
  0x18   :  { %p259_p3 = por %p258_p2, %p257_p1 }
  0x19   :  { %224 = vmatpush3.bf16.msra.mxu0 %v223_v39  ;;  %246 = vmatpush3.bf16.msra.mxu1 %v223_v39 }
  0x1a   :  { %226 = vmatprep.subr.bf16.mxu0 %v225_v40  ;;  %239 = vmatprep.subr.bf16.mxu1 %v225_v40  ;;  %p260_p4 = pnand %p259_p3, %p253_p0 }
  0x1d   :  { %228 = vmatpush3.bf16.msra.mxu0 %v227_v45  ;;  %247 = vmatpush3.bf16.msra.mxu1 %v227_v45 }
  0x1e   :  { %230 = vmatprep.subr.bf16.mxu0 %v229_v46  ;;  %240 = vmatprep.subr.bf16.mxu1 %v229_v46 }
  0x21   :  { %232 = vmatpush3.bf16.msra.mxu0 %v231_v49  ;;  %248 = vmatpush3.bf16.msra.mxu1 %v231_v49 }
  0x24   :  { %117 = vmatmul.mubr.f32.vlgmr.msra.gmra.mrb[0].mxu0 %v12_v50  ;;  %127 = vmatmul.mubr.f32.vlgmr.msra.gmra.mrb[0].mxu1 %v16_v51 }
  0x25   :  { %121 = vmatprep.mubr.f32.mxu0 %v15_v52  ;;  %131 = vmatprep.mubr.f32.mxu1 %v19_v53 }
  0x28   :  { %122 = vmatmul.mubr.f32.gmra.mrb[2].mxu0 %v14_v54  ;;  %132 = vmatmul.mubr.f32.gmra.mrb[2].mxu1 %v18_v55 }
  0xf7   :  { %v189_v56 = vpop.f32.mrb[0].mxu0  ;;  %v195_v57 = vpop.f32.mrb[0].mxu1 }
  0xf8   :  { %v190_v58 = vpop.f32.mrb[1].mxu0  ;;  %v196_v59 = vpop.f32.mrb[1].mxu1 }
  0xf9   :  { %v191_v60 = vadd.f32 %v190_v58, %v189_v56  ;;  %v197_v61 = vadd.f32 %v196_v59, %v195_v57 }
  0xfb   :  { %137 = vst [vmem:[#allocation2] sm:$0xff] %v191_v60  ;;  %139 = vst [vmem:[#allocation2 + $0x10] sm:$0xff] %v197_v61  ;;  %v192_v62 = vpop.f32.mrb[2].mxu0  ;;  %v198_v63 = vpop.f32.mrb[2].mxu1 }
  0xfc   :  { %v193_v0 = vpop.f32.mrb[3].mxu0  ;;  %v199_v1 = vpop.f32.mrb[3].mxu1 }
  0xfd   :  { %v194_v2 = vadd.f32 %v193_v0, %v192_v62  ;;  %v200_v3 = vadd.f32 %v199_v1, %v198_v63 }
  0xff   :  { %138 = vst [vmem:[#allocation2 + $0x8] sm:$0xff] %v194_v2  ;;  %140 = vst [vmem:[#allocation2 + $0x18] sm:$0xff] %v200_v3 }
 0x100   :  { %263 = shalt.err (!%p260_p4)
}
 0x101   :  { %s264_s8 = scalar_lea.hbm %s428_s2, 512 }
 0x102   :  { %p265_p5 = scmp.ne.s32.totalorder %s428_s2, %s264_s8  ;;  %p268_p6 = scmp.lt.u32.totalorder %s264_s8, %s428_s2 }
 0x104   :  { %p270_p7 = pnand %p268_p6, %p265_p5 }
 0x106   :  { %273 = shalt.err (!%p270_p7)
}
 0x107   :  { %s277_s13 = smov 128   ;;  %s278_s14 = smov 8  }
 0x108   :  { %152 = dma.vmem_to_hbm [thread:$0]  %s147_s5, 512, %s428_s2, [#allocation3], %s277_s13, %s277_s13, %s278_s14  }
 0x109   :  { %274 = dma.done.wait [#allocation3], 512  }
 0x10a   :  { %275 = vsyncadd [#allocation3], 4294966784 }
 0x10b   :  { %156 = vsyncpa [#allocation3], 1 }

</bundles_post_ra>
